<compile_context>
chip_gen: v7x
topology: tpu7x:2x2x1
jax: 0.10.0
libtpu: 0.0.40
codegen_flags: <defaults>
</compile_context>

<pallas_src>
import functools

import jax
import jax.numpy as jnp
from jax.experimental import pallas as pl
from jax.experimental.pallas import tpu as pltpu

LANES = 128
SUBLANES = 8
MAX_BLOCK_ROWS = 8192            # (8192,128) f32 = 4 MiB / input / buffer
_PACK = {4: 8, 2: 16, 1: 32}     # sublane-packing multiple by dtype itemsize
_NATIVE = (jnp.dtype(jnp.float32), jnp.dtype(jnp.bfloat16), jnp.dtype(jnp.float16))


def _canonical_float(x):
    """Keep narrow float dtypes native (loaded raw, upcast in-kernel)."""
    return x if jnp.dtype(x.dtype) in _NATIVE else x.astype(jnp.float32)


def _masked_rmse_partial_kernel(preds_ref, labels_ref, out_ref, *, block_rows):
    # Native narrow loads, widen in-register (halves HBM traffic for bf16).
    preds = preds_ref[...].astype(jnp.float32)
    labels = labels_ref[...].astype(jnp.float32)

    label_ok = jnp.logical_not(jnp.isnan(labels))   # raw validity mask
    diff = preds - labels
    sq = diff * diff                                # NaN where label OR pred is NaN
    loss_ok = jnp.logical_not(jnp.isnan(sq))        # keep: preds may carry NaNs

    mask_f = label_ok.astype(jnp.float32)
    loss_f = jnp.where(loss_ok, sq, 0.0)

    # (block_rows,128) -> (8,128) partials with pure VPU adds over vreg-aligned
    # groups; the single cross-lane reduce happens once, outside the kernel.
    g = block_rows // SUBLANES
    out_ref[0, 0, :, :] = mask_f.reshape(g, SUBLANES, LANES).sum(axis=0)
    out_ref[0, 1, :, :] = loss_f.reshape(g, SUBLANES, LANES).sum(axis=0)


def _plain_partial_sums(preds, labels):
    """Plain-JAX partial sums for the (small) ragged tail."""
    preds = preds.astype(jnp.float32)
    labels = labels.astype(jnp.float32)
    sm = jnp.sum(jnp.logical_not(jnp.isnan(labels)).astype(jnp.float32))
    diff = preds - labels
    sq = diff * diff
    sl = jnp.sum(jnp.where(jnp.isnan(sq), 0.0, sq))
    return sm, sl


@jax.jit
def masked_rmse(preds, labels):
    preds = _canonical_float(preds).reshape(-1)
    labels = _canonical_float(labels).reshape(-1)
    n = preds.shape[0]

    pack = max(_PACK[jnp.dtype(preds.dtype).itemsize],
               _PACK[jnp.dtype(labels.dtype).itemsize])
    rows_total = n // LANES
    rows_packed = (rows_total // pack) * pack       # rows the kernel can cover

    sm = jnp.float32(0.0)
    sl = jnp.float32(0.0)
    n_main = 0

    if rows_packed > 0:
        # Balance the grid so the ragged remainder stays tiny while per-step
        # tiles stay in the 1-4 MiB sweet spot.
        grid = -(-rows_packed // MAX_BLOCK_ROWS)                  # cdiv
        block_rows = (rows_packed // grid // pack) * pack          # round down
        grid = rows_packed // block_rows
        n_main = grid * block_rows * LANES

        preds_2d = preds[:n_main].reshape(grid * block_rows, LANES)
        labels_2d = labels[:n_main].reshape(grid * block_rows, LANES)

        kernel = functools.partial(_masked_rmse_partial_kernel,
                                   block_rows=block_rows)
        partials = pl.pallas_call(
            kernel,
            out_shape=jax.ShapeDtypeStruct((grid, 2, SUBLANES, LANES),
                                           jnp.float32),
            grid=(grid,),
            in_specs=[
                pl.BlockSpec((block_rows, LANES), lambda i: (i, 0)),
                pl.BlockSpec((block_rows, LANES), lambda i: (i, 0)),
            ],
            out_specs=pl.BlockSpec((1, 2, SUBLANES, LANES),
                                   lambda i: (i, 0, 0, 0)),
            compiler_params=pltpu.CompilerParams(
                dimension_semantics=("parallel",),   # private slots: megacore-safe
                vmem_limit_bytes=32 << 20,
            ),
        )(preds_2d, labels_2d)

        sums = jnp.sum(partials, axis=(0, 2, 3))     # (2,)
        sm = sums[0]
        sl = sums[1]

    if n_main < n:
        # Ragged tail (< one tile + one lane row): a single fused XLA reduce.
        # No full-array pad copy, no per-step in-kernel tail masking.
        tsm, tsl = _plain_partial_sums(preds[n_main:], labels[n_main:])
        sm = sm + tsm
        sl = sl + tsl

    safe_sm = jnp.where(sm > 0.0, sm, 1.0)
    mean_loss = jnp.where(sm > 0.0, sl / safe_sm, 0.0)   # all-NaN labels -> 0
    return jnp.sqrt(mean_loss)


def _reference(preds, labels):
    # Pure-JAX mirror of the PyTorch module, for a sanity check.
    preds = preds.astype(jnp.float32)
    labels = labels.astype(jnp.float32)
    mask = (~jnp.isnan(labels)).astype(jnp.float32)
    mask = mask / jnp.mean(mask)
    mask = jnp.where(jnp.isnan(mask), jnp.zeros_like(mask), mask)
    loss = (preds - labels) ** 2
    loss = loss * mask
    loss = jnp.where(jnp.isnan(loss), jnp.zeros_like(loss), loss)
    return jnp.sqrt(jnp.mean(loss))


if __name__ == "__main__":
    key = jax.random.PRNGKey(0)
    k1, k2, k3, k4 = jax.random.split(key, 4)

    # 1) f32 demand-style NCHW tensor (lane-aligned -> pure kernel path).
    shape = (2, 4, 16, 16)
    preds = jax.random.normal(k1, shape, dtype=jnp.float32)
    labels = jax.random.normal(k2, shape, dtype=jnp.float32)
    nan_mask = jax.random.bernoulli(k3, p=0.2, shape=shape)
    labels = jnp.where(nan_mask, jnp.nan, labels)
    out = jax.block_until_ready(masked_rmse(preds, labels))
    ref = jax.block_until_ready(_reference(preds, labels))
    assert jnp.isfinite(out), "kernel produced non-finite output"
    assert jnp.allclose(out, ref, rtol=1e-5, atol=1e-6), (out, ref)

    # 2) bf16 inputs -> native narrow loads + in-kernel upcast (pack=16 path).
    preds_bf = preds.astype(jnp.bfloat16)
    labels_bf = labels.astype(jnp.bfloat16)
    out_bf = jax.block_until_ready(masked_rmse(preds_bf, labels_bf))
    ref_bf = jax.block_until_ready(
        _reference(preds_bf.astype(jnp.float32), labels_bf.astype(jnp.float32)))
    assert jnp.allclose(out_bf, ref_bf, rtol=1e-5, atol=1e-6), (out_bf, ref_bf)

    # 3) Ragged size (not a multiple of 128) -> kernel prefix + plain-JAX tail.
    shape3 = (5, 7, 11, 13)   # 5005 elements
    p3 = jax.random.normal(k4, shape3, dtype=jnp.float32)
    l3 = jnp.where(jax.random.bernoulli(k3, p=0.3, shape=shape3), jnp.nan,
                   jax.random.normal(k2, shape3, dtype=jnp.float32))
    out3 = jax.block_until_ready(masked_rmse(p3, l3))
    ref3 = jax.block_until_ready(_reference(p3, l3))
    assert jnp.allclose(out3, ref3, rtol=1e-5, atol=1e-6), (out3, ref3)

    print("KERNEL_OK")
</pallas_src>

<mosaic_0001>
module attributes {stable_mosaic.version = 11 : i64} {
  func.func @_masked_rmse_partial_kernel(%arg0: i32, %arg1: memref<16x128xf32, #tpu.memory_space<vmem>>, %arg2: memref<16x128xf32, #tpu.memory_space<vmem>>, %arg3: memref<1x2x8x128xf32, #tpu.memory_space<vmem>>) attributes {dimension_semantics = [#tpu.dimension_semantics<parallel>], iteration_bounds = array<i64: 1>, scalar_prefetch = 0 : i64, scratch_operands = 0 : i64, tpu.core_type = #tpu.core_type<tc>, window_params = [{transform_indices = @transform_0, window_bounds = array<i64: 16, 128>}, {transform_indices = @transform_1, window_bounds = array<i64: 16, 128>}, {transform_indices = @transform_2, window_bounds = array<i64: 1, 2, 8, 128>}]} {
    %c0 = arith.constant 0 : index
    %c0_0 = arith.constant 0 : index
    %0 = vector.load %arg1[%c0, %c0_0] : memref<16x128xf32, #tpu.memory_space<vmem>>, vector<16x128xf32>
    %c0_1 = arith.constant 0 : index
    %c0_2 = arith.constant 0 : index
    %1 = vector.load %arg2[%c0_1, %c0_2] : memref<16x128xf32, #tpu.memory_space<vmem>>, vector<16x128xf32>
    %2 = arith.cmpf one, %1, %1 : vector<16x128xf32>
    %cst = arith.constant dense<true> : vector<16x128xi1>
    %3 = arith.xori %2, %cst : vector<16x128xi1>
    %4 = arith.subf %0, %1 : vector<16x128xf32>
    %5 = arith.mulf %4, %4 : vector<16x128xf32>
    %6 = arith.cmpf one, %5, %5 : vector<16x128xf32>
    %cst_3 = arith.constant dense<true> : vector<16x128xi1>
    %7 = arith.xori %6, %cst_3 : vector<16x128xi1>
    %8 = arith.extui %3 : vector<16x128xi1> to vector<16x128xi32>
    %9 = arith.sitofp %8 : vector<16x128xi32> to vector<16x128xf32>
    %cst_4 = arith.constant 0.000000e+00 : f32
    %10 = vector.broadcast %cst_4 : f32 to vector<16x128xf32>
    %11 = arith.select %7, %5, %10 : vector<16x128xi1>, vector<16x128xf32>
    %12 = vector.shape_cast %9 : vector<16x128xf32> to vector<2x8x128xf32>
    %cst_5 = arith.constant dense<0.000000e+00> : vector<8x128xf32>
    %13 = vector.multi_reduction <add>, %12, %cst_5 [0] : vector<2x8x128xf32> to vector<8x128xf32>
    %c0_6 = arith.constant 0 : index
    %c0_7 = arith.constant 0 : index
    %c0_8 = arith.constant 0 : index
    %c0_9 = arith.constant 0 : index
    %14 = vector.load %arg3[%c0_6, %c0_7, %c0_8, %c0_9] : memref<1x2x8x128xf32, #tpu.memory_space<vmem>>, vector<1x1x8x128xf32>
    %15 = vector.shape_cast %14 : vector<1x1x8x128xf32> to vector<8x128xf32>
    %16 = vector.shape_cast %13 : vector<8x128xf32> to vector<1x1x8x128xf32>
    tpu.vector_store %arg3[%c0_6, %c0_7, %c0_8, %c0_9], %16 {strides = array<i32>} : memref<1x2x8x128xf32, #tpu.memory_space<vmem>>, vector<1x1x8x128xf32>,
    %17 = vector.shape_cast %11 : vector<16x128xf32> to vector<2x8x128xf32>
    %cst_10 = arith.constant dense<0.000000e+00> : vector<8x128xf32>
    %18 = vector.multi_reduction <add>, %17, %cst_10 [0] : vector<2x8x128xf32> to vector<8x128xf32>
    %c0_11 = arith.constant 0 : index
    %c1 = arith.constant 1 : index
    %c0_12 = arith.constant 0 : index
    %c0_13 = arith.constant 0 : index
    %19 = vector.load %arg3[%c0_11, %c1, %c0_12, %c0_13] : memref<1x2x8x128xf32, #tpu.memory_space<vmem>>, vector<1x1x8x128xf32>
    %20 = vector.shape_cast %19 : vector<1x1x8x128xf32> to vector<8x128xf32>
    %21 = vector.shape_cast %18 : vector<8x128xf32> to vector<1x1x8x128xf32>
    tpu.vector_store %arg3[%c0_11, %c1, %c0_12, %c0_13], %21 {strides = array<i32>} : memref<1x2x8x128xf32, #tpu.memory_space<vmem>>, vector<1x1x8x128xf32>,
    return
  }
  func.func @transform_0(%arg0: i32) -> (i32, i32) {
    %c0_i32 = arith.constant 0 : i32
    %c0_i32_0 = arith.constant 0 : i32
    return %arg0, %c0_i32 : i32, i32
  }
  func.func @transform_1(%arg0: i32) -> (i32, i32) {
    %c0_i32 = arith.constant 0 : i32
    %c0_i32_0 = arith.constant 0 : i32
    return %arg0, %c0_i32 : i32, i32
  }
  func.func @transform_2(%arg0: i32) -> (i32, i32, i32, i32) {
    %c0_i32 = arith.constant 0 : i32
    %c0_i32_0 = arith.constant 0 : i32
    %c0_i32_1 = arith.constant 0 : i32
    %c0_i32_2 = arith.constant 0 : i32
    return %arg0, %c0_i32, %c0_i32_0, %c0_i32_1 : i32, i32, i32, i32
  }
}

</mosaic_0001>

<bundles_post_ra>
// kernel: masked_rmse.1
= control target key start
LH: loop header
LB: loop body
LE: loop exit
PB: predicated region body
PF: predicated region fallthrough
CT: control target
= control target key end

     0   :  { %vm47_vm2 = vmmov 1   ;;  %v48_v6 = vmov 0.0   ;;  %s86_s1 = inlined_call_operand.vmem [shape: f32[16,128], index: 1, kind: input, shape index: {}]   ;;  %s87_s0 = inlined_call_operand.vmem [shape: f32[16,128], index: 0, kind: input, shape index: {}]   ;;  %s88_s2 = inlined_call_operand.vmem [shape: f32[1,2,8,128], index: 2, kind: output, shape index: {}]  }
   0x1   :  { %v13_v0 = vld [vmem:[%s86_s1] sm:$0xff]  ;;  %v14_v1 = vld [vmem:[%s86_s1 + $0x8] sm:$0xff] }
   0x2   :  { %v11_v2 = vld [vmem:[%s87_s0] sm:$0xff]  ;;  %vm15_vm0 = vcmp.ne.f32.partialorder %v13_v0, %v13_v0  ;;  %vm16_vm1 = vcmp.ne.f32.partialorder %v14_v1, %v14_v1  ;;  %v12_v3 = vld [vmem:[%s87_s0 + $0x8] sm:$0xff] }
   0x3   :  { %v19_v4 = vsub.f32 %v11_v2, %v13_v0  ;;  %vm17_vm3 = vmxor %vm15_vm0, %vm47_vm2  ;;  %v20_v5 = vsub.f32 %v12_v3, %v14_v1 }
   0x4   :  { %vm18_vm4 = vmxor %vm16_vm1, %vm47_vm2  ;;  %v42_v7 = vsel %vm17_vm3, 1.0, %v48_v6 }
   0x5   :  { %v21_v8 = vmul.f32 %v19_v4, %v19_v4  ;;  %v43_v9 = vsel %vm18_vm4, 1.0, %v48_v6  ;;  %v22_v10 = vmul.f32 %v20_v5, %v20_v5 }
   0x6   :  { %v33_v11 = vadd.f32 %v43_v9, %v42_v7 }
   0x7   :  { %vm23_vm5 = vcmp.ne.f32.partialorder %v21_v8, %v21_v8  ;;  %vm24_vm6 = vcmp.ne.f32.partialorder %v22_v10, %v22_v10 }
   0x8   :  { %vm25_vm7 = vmxor %vm23_vm5, %vm47_vm2  ;;  %34 = vst [vmem:[%s88_s2] sm:$0xff] %v33_v11 }
   0x9   :  { %vm26_vm8 = vmxor %vm24_vm6, %vm47_vm2  ;;  %v31_v12 = vsel %vm25_vm7, %v21_v8, 0.0 }
   0xa   :  { %v32_v13 = vsel %vm26_vm8, %v22_v10, 0.0 }
   0xb   :  { %v35_v14 = vadd.f32 %v32_v13, %v31_v12 }
   0xd   :  { %44 = vst [vmem:[%s88_s2 + $0x8] sm:$0xff] %v35_v14 }

</bundles_post_ra>
